<compile_context>
chip_gen: v5e
topology: v5e:2x2
jax: 0.10.0
libtpu: 0.0.40
codegen_flags: <defaults>
</compile_context>

<pallas_src>
import jax
import jax.numpy as jnp
from jax import lax
from jax.experimental import pallas as pl
from jax.experimental.pallas import tpu as pltpu


# ----------------------------------------------------------------------------
# Fused Summarizer kernel: one grid step per batch element.
# ----------------------------------------------------------------------------
def summarizer_kernel(emb_rdm_ref, emb_x_ref, rdm_clss_ref, rdm_mask_ref,
                      clss_ref, mask_row_ref,
                      wb_ref, bb_ref, wt_ref, bt_ref, wc_ref, bc_ref,
                      o_ref):
    f32 = jnp.float32
    S = emb_rdm_ref.shape[0]          # sequence length
    NS = rdm_clss_ref.shape[0]        # number of sentences (CLS tokens)

    wb = wb_ref[...]                  # [H,H] bf16 (resident once per grid step)
    bb = bb_ref[...]                  # [1,H] f32

    # ---------------- random-document branch -> topic vector ----------------
    # BERT-extractor stand-in: per-token dense + tanh (MXU, bf16 in, f32 acc).
    rdm_top = jnp.tanh(
        jnp.dot(emb_rdm_ref[...], wb, preferred_element_type=f32) + bb)   # [S,H]

    # Masked CLS gather as a one-hot matmul (vectorized, no per-row loop):
    #   onehot[n, s] = (s == rdm_clss[n]) * rdm_mask_cls[n]
    s_iota = lax.broadcasted_iota(jnp.int32, (NS, S), 1)                   # [NS,S]
    rdm_onehot = (s_iota == rdm_clss_ref[...]).astype(f32) * rdm_mask_ref[...]
    rdm_sents = jnp.dot(rdm_onehot, rdm_top, preferred_element_type=f32)   # [NS,H]

    # topicmodel stand-in: dense + relu, then mean over the sentence axis
    # (matches torch.mean(topic, 1), which divides by NS regardless of mask).
    act = jnp.maximum(
        jnp.dot(rdm_sents.astype(jnp.bfloat16), wt_ref[...],
                preferred_element_type=f32) + bt_ref[...], 0.0)            # [NS,H]
    topic = jnp.mean(act, axis=0, keepdims=True)                           # [1,H]

    # ---------------- source-document branch -> sentence scores -------------
    top_x = jnp.tanh(
        jnp.dot(emb_x_ref[...], wb, preferred_element_type=f32) + bb)      # [S,H]

    # Fold the Classifier weight into the topic vector once per batch element:
    #   logits[n] = sum_h top_x[clss[n], h] * topic[h] * w_cls[h]
    # (masking sents before the linear is unnecessary: the final *mask_cls
    #  zeroes masked sentences either way, identical to the PyTorch result.)
    v = topic * wc_ref[...]                                                # [1,H]
    tv = lax.dot_general(v, top_x, (((1,), (1,)), ((), ())),
                         preferred_element_type=f32)                       # [1,S]
    onehot_x = (s_iota == clss_ref[...]).astype(f32)                       # [NS,S]
    logits = lax.dot_general(tv, onehot_x, (((1,), (1,)), ((), ())),
                             preferred_element_type=f32)                   # [1,NS]

    # Classifier: sigmoid + mask_cls; lane-dense [1, NS] store.
    o_ref[...] = jax.nn.sigmoid(logits + bc_ref[...]) * mask_row_ref[...]


# ----------------------------------------------------------------------------
# Summarizer.forward equivalent
# ----------------------------------------------------------------------------
def summarizer_forward(params, x, segs, clss, mask, mask_cls,
                       rdm_src, rdm_segs, rdm_clss, rdm_mask, rdm_mask_cls, sents):
    # segs / mask / rdm_segs / rdm_mask / sents are unused by the synthetic
    # BERT stand-in (kept to preserve the original call signature).
    del segs, mask, rdm_segs, rdm_mask, sents

    # Glue: embedding lookup over the vocab (standard XLA gather), in bf16.
    embed = params["embed"].astype(jnp.bfloat16)
    emb_x = jnp.take(embed, x, axis=0)                                 # [B,S,H]
    emb_rdm = jnp.take(embed, rdm_src, axis=0)                         # [B,S,H]

    B, S, H = emb_x.shape
    NS = clss.shape[1]

    # Layout plumbing: indices / mask as tiny column tiles for the one-hot
    # gather, plus a lane-dense [B,1,NS] copy of mask_cls for the final multiply.
    rdm_clss_col = rdm_clss.astype(jnp.int32)[:, :, None]              # [B,NS,1]
    rdm_mask_col = rdm_mask_cls.astype(jnp.float32)[:, :, None]        # [B,NS,1]
    clss_col = clss.astype(jnp.int32)[:, :, None]                      # [B,NS,1]
    mask_row = mask_cls.astype(jnp.float32)[:, None, :]                # [B,1,NS]

    wb = params["w_bert"].astype(jnp.bfloat16)
    wt = params["w_topic"].astype(jnp.bfloat16)

    scores = pl.pallas_call(
        summarizer_kernel,
        out_shape=jax.ShapeDtypeStruct((B, 1, NS), jnp.float32),
        grid=(B,),
        in_specs=[
            pl.BlockSpec((None, S, H), lambda i: (i, 0, 0)),    # emb_rdm
            pl.BlockSpec((None, S, H), lambda i: (i, 0, 0)),    # emb_x
            pl.BlockSpec((None, NS, 1), lambda i: (i, 0, 0)),   # rdm_clss
            pl.BlockSpec((None, NS, 1), lambda i: (i, 0, 0)),   # rdm_mask_cls
            pl.BlockSpec((None, NS, 1), lambda i: (i, 0, 0)),   # clss
            pl.BlockSpec((None, 1, NS), lambda i: (i, 0, 0)),   # mask_cls (lane-dense)
            pl.BlockSpec((H, H), lambda i: (0, 0)),             # w_bert (bf16)
            pl.BlockSpec((1, H), lambda i: (0, 0)),             # b_bert
            pl.BlockSpec((H, H), lambda i: (0, 0)),             # w_topic (bf16)
            pl.BlockSpec((1, H), lambda i: (0, 0)),             # b_topic
            pl.BlockSpec((1, H), lambda i: (0, 0)),             # w_cls
            pl.BlockSpec((1, 1), lambda i: (0, 0)),             # b_cls
        ],
        out_specs=pl.BlockSpec((None, 1, NS), lambda i: (i, 0, 0)),
        compiler_params=pltpu.CompilerParams(
            dimension_semantics=("parallel",)),   # batch steps independent -> v7x 2 TCs
    )(emb_rdm, emb_x, rdm_clss_col, rdm_mask_col, clss_col, mask_row,
      wb, params["b_bert"], wt, params["b_topic"],
      params["w_cls"], params["b_cls"])

    sent_scores = scores[:, 0, :]                                      # [B,NS]
    return sent_scores, mask_cls


def init_params(key, vocab, hidden):
    k_emb, k_wb, k_wt, k_wc = jax.random.split(key, 4)
    glorot = lambda k, shp: jax.random.normal(k, shp, jnp.float32) * jnp.sqrt(
        2.0 / (shp[0] + shp[1]))
    return {
        "embed": jax.random.normal(k_emb, (vocab, hidden), jnp.float32) * 0.02,
        "w_bert": glorot(k_wb, (hidden, hidden)),
        "b_bert": jnp.zeros((1, hidden), jnp.float32),
        "w_topic": glorot(k_wt, (hidden, hidden)),
        "b_topic": jnp.zeros((1, hidden), jnp.float32),
        "w_cls": glorot(k_wc, (1, hidden)),        # Classifier: Linear(H, 1)
        "b_cls": jnp.zeros((1, 1), jnp.float32),
    }


# Pure-JAX reference (same bf16 casts as the kernel) for a sanity check.
def reference_forward(params, x, clss, mask_cls, rdm_src, rdm_clss, rdm_mask_cls):
    f32 = jnp.float32
    embed = params["embed"].astype(jnp.bfloat16).astype(f32)
    wb = params["w_bert"].astype(jnp.bfloat16).astype(f32)
    wt = params["w_topic"].astype(jnp.bfloat16).astype(f32)

    def bert(tokens):
        emb = jnp.take(embed, tokens, axis=0)
        return jnp.tanh(jnp.einsum("bsh,hk->bsk", emb, wb) + params["b_bert"][0])

    b_idx = jnp.arange(x.shape[0])[:, None]
    rdm_top = bert(rdm_src)
    rdm_sents = rdm_top[b_idx, rdm_clss] * rdm_mask_cls[:, :, None]
    act = jnp.maximum(
        jnp.einsum("bnh,hk->bnk", rdm_sents.astype(jnp.bfloat16).astype(f32), wt)
        + params["b_topic"][0], 0.0)
    topic = jnp.mean(act, axis=1)                                      # [B,H]

    top = bert(x)
    sents = top[b_idx, clss] * mask_cls[:, :, None]
    new_sents = sents * topic[:, None, :]
    logits = jnp.einsum("bnh,h->bn", new_sents, params["w_cls"][0]) + params["b_cls"][0, 0]
    return jax.nn.sigmoid(logits) * mask_cls


if __name__ == "__main__":
    B, SEQ, N_SENTS, H, VOCAB = 2, 16, 8, 128, 32

    root = jax.random.PRNGKey(0)
    kp, k1, k2, k3, k4, k5, k6 = jax.random.split(root, 7)

    params = init_params(kp, VOCAB, H)

    x = jax.random.randint(k1, (B, SEQ), 0, VOCAB, dtype=jnp.int32)
    rdm_src = jax.random.randint(k2, (B, SEQ), 0, VOCAB, dtype=jnp.int32)
    clss = jnp.sort(jax.random.randint(k3, (B, N_SENTS), 0, SEQ, dtype=jnp.int32), axis=-1)
    rdm_clss = jnp.sort(jax.random.randint(k4, (B, N_SENTS), 0, SEQ, dtype=jnp.int32), axis=-1)
    mask_cls = (jax.random.uniform(k5, (B, N_SENTS)) > 0.2).astype(jnp.float32)
    rdm_mask_cls = (jax.random.uniform(k6, (B, N_SENTS)) > 0.2).astype(jnp.float32)
    segs = jnp.zeros((B, SEQ), jnp.int32)
    rdm_segs = jnp.zeros((B, SEQ), jnp.int32)
    mask = jnp.ones((B, SEQ), jnp.float32)
    rdm_mask = jnp.ones((B, SEQ), jnp.float32)
    sents = None  # raw sentence strings in the original; unused by the kernel

    sent_scores, mask_cls_out = summarizer_forward(
        params, x, segs, clss, mask, mask_cls,
        rdm_src, rdm_segs, rdm_clss, rdm_mask, rdm_mask_cls, sents)
    jax.block_until_ready(sent_scores)

    assert sent_scores.shape == (B, N_SENTS)
    assert mask_cls_out.shape == (B, N_SENTS)

    ref = reference_forward(params, x, clss, mask_cls, rdm_src, rdm_clss, rdm_mask_cls)
    assert bool(jnp.allclose(sent_scores, ref, atol=1e-2, rtol=1e-2)), "mismatch vs reference"

    print("KERNEL_OK")
</pallas_src>

<mosaic_0001>
module attributes {stable_mosaic.version = 11 : i64} {
  func.func @summarizer_kernel(%arg0: i32, %arg1: memref<1x16x128xbf16, #tpu.memory_space<vmem>>, %arg2: memref<1x16x128xbf16, #tpu.memory_space<vmem>>, %arg3: memref<1x8x1xi32, #tpu.memory_space<vmem>>, %arg4: memref<1x8x1xf32, #tpu.memory_space<vmem>>, %arg5: memref<1x8x1xi32, #tpu.memory_space<vmem>>, %arg6: memref<1x1x8xf32, #tpu.memory_space<vmem>>, %arg7: memref<128x128xbf16, #tpu.memory_space<vmem>>, %arg8: memref<1x128xf32, #tpu.memory_space<vmem>>, %arg9: memref<128x128xbf16, #tpu.memory_space<vmem>>, %arg10: memref<1x128xf32, #tpu.memory_space<vmem>>, %arg11: memref<1x128xf32, #tpu.memory_space<vmem>>, %arg12: memref<1x1xf32, #tpu.memory_space<vmem>>, %arg13: memref<1x1x8xf32, #tpu.memory_space<vmem>>) attributes {dimension_semantics = [#tpu.dimension_semantics<parallel>], iteration_bounds = array<i64: 2>, scalar_prefetch = 0 : i64, scratch_operands = 0 : i64, tpu.core_type = #tpu.core_type<tc>, window_params = [{transform_indices = @transform_0, window_bounds = array<i64: 1, 16, 128>}, {transform_indices = @transform_1, window_bounds = array<i64: 1, 16, 128>}, {transform_indices = @transform_2, window_bounds = array<i64: 1, 8, 1>}, {transform_indices = @transform_3, window_bounds = array<i64: 1, 8, 1>}, {transform_indices = @transform_4, window_bounds = array<i64: 1, 8, 1>}, {transform_indices = @transform_5, window_bounds = array<i64: 1, 1, 8>}, {pipeline_mode = #tpu.pipeline_mode<synchronous>, transform_indices = @transform_6, window_bounds = array<i64: 128, 128>}, {pipeline_mode = #tpu.pipeline_mode<synchronous>, transform_indices = @transform_7, window_bounds = array<i64: 1, 128>}, {pipeline_mode = #tpu.pipeline_mode<synchronous>, transform_indices = @transform_8, window_bounds = array<i64: 128, 128>}, {pipeline_mode = #tpu.pipeline_mode<synchronous>, transform_indices = @transform_9, window_bounds = array<i64: 1, 128>}, {pipeline_mode = #tpu.pipeline_mode<synchronous>, transform_indices = @transform_10, window_bounds = array<i64: 1, 128>}, {pipeline_mode = #tpu.pipeline_mode<synchronous>, transform_indices = @transform_11, window_bounds = array<i64: 1, 1>}, {transform_indices = @transform_12, window_bounds = array<i64: 1, 1, 8>}]} {
    %c0 = arith.constant 0 : index
    %c0_0 = arith.constant 0 : index
    %0 = vector.load %arg7[%c0, %c0_0] : memref<128x128xbf16, #tpu.memory_space<vmem>>, vector<128x128xbf16>
    %c0_1 = arith.constant 0 : index
    %c0_2 = arith.constant 0 : index
    %1 = vector.load %arg8[%c0_1, %c0_2] : memref<1x128xf32, #tpu.memory_space<vmem>>, vector<1x128xf32>
    %c0_3 = arith.constant 0 : index
    %c0_4 = arith.constant 0 : index
    %c0_5 = arith.constant 0 : index
    %2 = vector.load %arg1[%c0_3, %c0_4, %c0_5] : memref<1x16x128xbf16, #tpu.memory_space<vmem>>, vector<1x16x128xbf16>
    %3 = vector.shape_cast %2 : vector<1x16x128xbf16> to vector<16x128xbf16>
    %cst = arith.constant dense<0.000000e+00> : vector<16x128xf32>
    %4 = tpu.matmul %3, %0, %cst {dimension_numbers = #tpu.dot_dimension_numbers<[1], [0], [0], [1], [0, 0, 1, 1], [], []>} : vector<16x128xbf16>, vector<128x128xbf16>, vector<16x128xf32> -> vector<16x128xf32>
    %5 = vector.broadcast %1 : vector<1x128xf32> to vector<16x128xf32>
    %6 = arith.addf %4, %5 : vector<16x128xf32>
    %7 = math.tanh %6 : vector<16x128xf32>
    %8 = tpu.iota {dimensions = array<i32: 1>} : vector<8x16xi32>
    %c0_6 = arith.constant 0 : index
    %c0_7 = arith.constant 0 : index
    %c0_8 = arith.constant 0 : index
    %9 = vector.load %arg3[%c0_6, %c0_7, %c0_8] : memref<1x8x1xi32, #tpu.memory_space<vmem>>, vector<1x8x1xi32>
    %10 = vector.shape_cast %9 : vector<1x8x1xi32> to vector<8x1xi32>
    %11 = vector.broadcast %10 : vector<8x1xi32> to vector<8x16xi32>
    %12 = arith.cmpi eq, %8, %11 : vector<8x16xi32>
    %13 = arith.extui %12 : vector<8x16xi1> to vector<8x16xi32>
    %14 = arith.sitofp %13 : vector<8x16xi32> to vector<8x16xf32>
    %c0_9 = arith.constant 0 : index
    %c0_10 = arith.constant 0 : index
    %c0_11 = arith.constant 0 : index
    %15 = vector.load %arg4[%c0_9, %c0_10, %c0_11] : memref<1x8x1xf32, #tpu.memory_space<vmem>>, vector<1x8x1xf32>
    %16 = vector.shape_cast %15 : vector<1x8x1xf32> to vector<8x1xf32>
    %17 = vector.broadcast %16 : vector<8x1xf32> to vector<8x16xf32>
    %18 = arith.mulf %14, %17 : vector<8x16xf32>
    %cst_12 = arith.constant dense<0.000000e+00> : vector<8x128xf32>
    %19 = tpu.matmul %18, %7, %cst_12 {dimension_numbers = #tpu.dot_dimension_numbers<[1], [0], [0], [1], [0, 0, 1, 1], [], []>} : vector<8x16xf32>, vector<16x128xf32>, vector<8x128xf32> -> vector<8x128xf32>
    %20 = arith.truncf %19 : vector<8x128xf32> to vector<8x128xbf16>
    %c0_13 = arith.constant 0 : index
    %c0_14 = arith.constant 0 : index
    %21 = vector.load %arg9[%c0_13, %c0_14] : memref<128x128xbf16, #tpu.memory_space<vmem>>, vector<128x128xbf16>
    %cst_15 = arith.constant dense<0.000000e+00> : vector<8x128xf32>
    %22 = tpu.matmul %20, %21, %cst_15 {dimension_numbers = #tpu.dot_dimension_numbers<[1], [0], [0], [1], [0, 0, 1, 1], [], []>} : vector<8x128xbf16>, vector<128x128xbf16>, vector<8x128xf32> -> vector<8x128xf32>
    %c0_16 = arith.constant 0 : index
    %c0_17 = arith.constant 0 : index
    %23 = vector.load %arg10[%c0_16, %c0_17] : memref<1x128xf32, #tpu.memory_space<vmem>>, vector<1x128xf32>
    %24 = vector.broadcast %23 : vector<1x128xf32> to vector<8x128xf32>
    %25 = arith.addf %22, %24 : vector<8x128xf32>
    %cst_18 = arith.constant 0.000000e+00 : f32
    %26 = vector.broadcast %cst_18 : f32 to vector<8x128xf32>
    %27 = arith.maximumf %25, %26 : vector<8x128xf32>
    %cst_19 = arith.constant dense<0.000000e+00> : vector<128xf32>
    %28 = vector.multi_reduction <add>, %27, %cst_19 [0] : vector<8x128xf32> to vector<128xf32>
    %29 = vector.shape_cast %28 : vector<128xf32> to vector<1x128xf32>
    %cst_20 = arith.constant 8.000000e+00 : f32
    %30 = vector.broadcast %cst_20 : f32 to vector<1x128xf32>
    %31 = arith.divf %29, %30 : vector<1x128xf32>
    %c0_21 = arith.constant 0 : index
    %c0_22 = arith.constant 0 : index
    %c0_23 = arith.constant 0 : index
    %32 = vector.load %arg2[%c0_21, %c0_22, %c0_23] : memref<1x16x128xbf16, #tpu.memory_space<vmem>>, vector<1x16x128xbf16>
    %33 = vector.shape_cast %32 : vector<1x16x128xbf16> to vector<16x128xbf16>
    %cst_24 = arith.constant dense<0.000000e+00> : vector<16x128xf32>
    %34 = tpu.matmul %33, %0, %cst_24 {dimension_numbers = #tpu.dot_dimension_numbers<[1], [0], [0], [1], [0, 0, 1, 1], [], []>} : vector<16x128xbf16>, vector<128x128xbf16>, vector<16x128xf32> -> vector<16x128xf32>
    %35 = vector.broadcast %1 : vector<1x128xf32> to vector<16x128xf32>
    %36 = arith.addf %34, %35 : vector<16x128xf32>
    %37 = math.tanh %36 : vector<16x128xf32>
    %c0_25 = arith.constant 0 : index
    %c0_26 = arith.constant 0 : index
    %38 = vector.load %arg11[%c0_25, %c0_26] : memref<1x128xf32, #tpu.memory_space<vmem>>, vector<1x128xf32>
    %39 = arith.mulf %31, %38 : vector<1x128xf32>
    %cst_27 = arith.constant dense<0.000000e+00> : vector<1x16xf32>
    %40 = tpu.matmul %39, %37, %cst_27 {dimension_numbers = #tpu.dot_dimension_numbers<[1], [1], [0], [0], [0, 0, 1, 0], [], []>} : vector<1x128xf32>, vector<16x128xf32>, vector<1x16xf32> -> vector<1x16xf32>
    %c0_28 = arith.constant 0 : index
    %c0_29 = arith.constant 0 : index
    %c0_30 = arith.constant 0 : index
    %41 = vector.load %arg5[%c0_28, %c0_29, %c0_30] : memref<1x8x1xi32, #tpu.memory_space<vmem>>, vector<1x8x1xi32>
    %42 = vector.shape_cast %41 : vector<1x8x1xi32> to vector<8x1xi32>
    %43 = vector.broadcast %42 : vector<8x1xi32> to vector<8x16xi32>
    %44 = arith.cmpi eq, %8, %43 : vector<8x16xi32>
    %45 = arith.extui %44 : vector<8x16xi1> to vector<8x16xi32>
    %46 = arith.sitofp %45 : vector<8x16xi32> to vector<8x16xf32>
    %cst_31 = arith.constant dense<0.000000e+00> : vector<1x8xf32>
    %47 = tpu.matmul %40, %46, %cst_31 {dimension_numbers = #tpu.dot_dimension_numbers<[1], [1], [0], [0], [0, 0, 1, 0], [], []>} : vector<1x16xf32>, vector<8x16xf32>, vector<1x8xf32> -> vector<1x8xf32>
    %c0_32 = arith.constant 0 : index
    %c0_33 = arith.constant 0 : index
    %48 = vector.load %arg12[%c0_32, %c0_33] : memref<1x1xf32, #tpu.memory_space<vmem>>, vector<1x1xf32>
    %49 = vector.broadcast %48 : vector<1x1xf32> to vector<1x8xf32>
    %50 = arith.addf %47, %49 : vector<1x8xf32>
    %51 = arith.negf %50 : vector<1x8xf32>
    %52 = math.exp %51 : vector<1x8xf32>
    %cst_34 = arith.constant 1.000000e+00 : f32
    %53 = vector.broadcast %cst_34 : f32 to vector<1x8xf32>
    %54 = arith.addf %53, %52 : vector<1x8xf32>
    %55 = arith.divf %53, %54 : vector<1x8xf32>
    %c0_35 = arith.constant 0 : index
    %c0_36 = arith.constant 0 : index
    %c0_37 = arith.constant 0 : index
    %56 = vector.load %arg6[%c0_35, %c0_36, %c0_37] : memref<1x1x8xf32, #tpu.memory_space<vmem>>, vector<1x1x8xf32>
    %57 = vector.shape_cast %56 : vector<1x1x8xf32> to vector<1x8xf32>
    %58 = arith.mulf %55, %57 : vector<1x8xf32>
    %c0_38 = arith.constant 0 : index
    %c0_39 = arith.constant 0 : index
    %c0_40 = arith.constant 0 : index
    %59 = vector.load %arg13[%c0_38, %c0_39, %c0_40] : memref<1x1x8xf32, #tpu.memory_space<vmem>>, vector<1x1x8xf32>
    %60 = vector.shape_cast %59 : vector<1x1x8xf32> to vector<1x8xf32>
    %61 = vector.shape_cast %58 : vector<1x8xf32> to vector<1x1x8xf32>
    tpu.vector_store %arg13[%c0_38, %c0_39, %c0_40], %61 {strides = array<i32>} : memref<1x1x8xf32, #tpu.memory_space<vmem>>, vector<1x1x8xf32>,
    return
  }
  func.func @transform_0(%arg0: i32) -> (i32, i32, i32) {
    %c0_i32 = arith.constant 0 : i32
    %c0_i32_0 = arith.constant 0 : i32
    %c0_i32_1 = arith.constant 0 : i32
    return %arg0, %c0_i32, %c0_i32_0 : i32, i32, i32
  }
  func.func @transform_1(%arg0: i32) -> (i32, i32, i32) {
    %c0_i32 = arith.constant 0 : i32
    %c0_i32_0 = arith.constant 0 : i32
    %c0_i32_1 = arith.constant 0 : i32
    return %arg0, %c0_i32, %c0_i32_0 : i32, i32, i32
  }
  func.func @transform_2(%arg0: i32) -> (i32, i32, i32) {
    %c0_i32 = arith.constant 0 : i32
    %c0_i32_0 = arith.constant 0 : i32
    %c0_i32_1 = arith.constant 0 : i32
    return %arg0, %c0_i32, %c0_i32_0 : i32, i32, i32
  }
  func.func @transform_3(%arg0: i32) -> (i32, i32, i32) {
    %c0_i32 = arith.constant 0 : i32
    %c0_i32_0 = arith.constant 0 : i32
    %c0_i32_1 = arith.constant 0 : i32
    return %arg0, %c0_i32, %c0_i32_0 : i32, i32, i32
  }
  func.func @transform_4(%arg0: i32) -> (i32, i32, i32) {
    %c0_i32 = arith.constant 0 : i32
    %c0_i32_0 = arith.constant 0 : i32
    %c0_i32_1 = arith.constant 0 : i32
    return %arg0, %c0_i32, %c0_i32_0 : i32, i32, i32
  }
  func.func @transform_5(%arg0: i32) -> (i32, i32, i32) {
    %c0_i32 = arith.constant 0 : i32
    %c0_i32_0 = arith.constant 0 : i32
    %c0_i32_1 = arith.constant 0 : i32
    return %arg0, %c0_i32, %c0_i32_0 : i32, i32, i32
  }
  func.func @transform_6(%arg0: i32) -> (i32, i32) {
    %c0_i32 = arith.constant 0 : i32
    %c0_i32_0 = arith.constant 0 : i32
    %c0_i32_1 = arith.constant 0 : i32
    return %c0_i32, %c0_i32_0 : i32, i32
  }
  func.func @transform_7(%arg0: i32) -> (i32, i32) {
    %c0_i32 = arith.constant 0 : i32
    %c0_i32_0 = arith.constant 0 : i32
    %c0_i32_1 = arith.constant 0 : i32
    return %c0_i32, %c0_i32_0 : i32, i32
  }
  func.func @transform_8(%arg0: i32) -> (i32, i32) {
    %c0_i32 = arith.constant 0 : i32
    %c0_i32_0 = arith.constant 0 : i32
    %c0_i32_1 = arith.constant 0 : i32
    return %c0_i32, %c0_i32_0 : i32, i32
  }
  func.func @transform_9(%arg0: i32) -> (i32, i32) {
    %c0_i32 = arith.constant 0 : i32
    %c0_i32_0 = arith.constant 0 : i32
    %c0_i32_1 = arith.constant 0 : i32
    return %c0_i32, %c0_i32_0 : i32, i32
  }
  func.func @transform_10(%arg0: i32) -> (i32, i32) {
    %c0_i32 = arith.constant 0 : i32
    %c0_i32_0 = arith.constant 0 : i32
    %c0_i32_1 = arith.constant 0 : i32
    return %c0_i32, %c0_i32_0 : i32, i32
  }
  func.func @transform_11(%arg0: i32) -> (i32, i32) {
    %c0_i32 = arith.constant 0 : i32
    %c0_i32_0 = arith.constant 0 : i32
    %c0_i32_1 = arith.constant 0 : i32
    return %c0_i32, %c0_i32_0 : i32, i32
  }
  func.func @transform_12(%arg0: i32) -> (i32, i32, i32) {
    %c0_i32 = arith.constant 0 : i32
    %c0_i32_0 = arith.constant 0 : i32
    %c0_i32_1 = arith.constant 0 : i32
    return %arg0, %c0_i32, %c0_i32_0 : i32, i32, i32
  }
}

</mosaic_0001>

<bundles_post_ra>
// kernel: tpu_custom_call.1
= control target key start
LH: loop header
LB: loop body
LE: loop exit
PB: predicated region body
PF: predicated region fallthrough
CT: control target
= control target key end

     0   :  { %s1574_s0 = inlined_call_operand.vmem [shape: bf16[2,16,128], index: 0, kind: input, shape index: {}]   ;;  %s1575_s1 = inlined_call_operand.vmem [shape: bf16[2,16,128], index: 1, kind: input, shape index: {}]   ;;  %s1576_s2 = inlined_call_operand.vmem [shape: s32[2,8,1], index: 2, kind: input, shape index: {}]   ;;  %s1577_s3 = inlined_call_operand.vmem [shape: f32[2,8,1], index: 3, kind: input, shape index: {}]   ;;  %s1578_s4 = inlined_call_operand.vmem [shape: s32[2,8,1], index: 4, kind: input, shape index: {}]   ;;  %s1579_s5 = inlined_call_operand.vmem [shape: f32[2,1,8], index: 5, kind: input, shape index: {}]   ;;  %s1580_s6 = inlined_call_operand.hbm [shape: bf16[128,128], index: 6, kind: input, shape index: {}]   ;;  %s1581_s7 = inlined_call_operand.vmem [shape: f32[1,128], index: 7, kind: input, shape index: {}]   ;;  %s1582_s8 = inlined_call_operand.hbm [shape: bf16[128,128], index: 8, kind: input, shape index: {}]   ;;  %s1583_s9 = inlined_call_operand.vmem [shape: f32[1,128], index: 9, kind: input, shape index: {}]   ;;  %s1584_s10 = inlined_call_operand.vmem [shape: f32[1,128], index: 10, kind: input, shape index: {}]   ;;  %s1585_s11 = inlined_call_operand.<no memory space> [shape: f32[1,1], index: 11, kind: input, shape index: {}]   ;;  %s1586_s12 = inlined_call_operand.hbm [shape: f32[2,1,8], index: 12, kind: output, shape index: {}]  }
   0x1   :  { %v17_v0 = vstv %s1585_s11 }
   0x2   :  { %18 = vst [vmem:[#allocation2] sm:$0x1] %v17_v0 }
   0x3   :  { %19 = vsyncpa [#allocation4], 0 }
   0x4   :  { %20 = vsyncpa [#allocation7], 0 }
   0x5   :  { %21 = vsyncpa [#allocation5], 0 }
   0x6   :  { %23 = vsyncpa [#allocation5 + $0x1], 0  ;;  %s1422_s23 = smov 0   ;;  %s1424_s24 = smov 0  }
   0x7   :  { %s1426_s25 = smov 0   ;;  %s1428_s26 = smov 0  }
   0x8 LB: > { %1588 = sst [smem:[#allocation12_spill]] %s1341_s25  ;;  %s1443_s11 = sadd.s32 4294967295, %s1345_s26   ;;  %s1345_s26 = sphi %s1428_s26, %s1597_s26   ;;  %s1341_s25 = sphi %s1426_s25, %s1594_s25   ;;  %s1337_s24 = sphi %s1424_s24, %s1596_s24   ;;  %s1333_s23 = sphi %s1422_s23, %s1595_s23  }
   0x9   : > { %s1017_s27 = sadd.s32 4294967294, %s1345_s26   ;;  %s1447_s28 = sadd.s32 1, %s1345_s26  }
   0xa   : > { %s318_s29 = sadd.s32 1, %s1341_s25  ;;  %s315_s30 = ssub.s32 %s1345_s26, %s1447_s28 }
   0xb   : > { %p328_p0 = scmp.ne.s32.totalorder %s1341_s25, %s1337_s24  ;;  %p316_p1 = scmp.eq.s32.totalorder %s315_s30, 0 }
   0xc   : > { %p329_p2 = scmp.eq.s32.totalorder %s1443_s11, 1  ;;  %p334_p3 = scmp.ne.s32.totalorder %s1337_s24, %s1333_s23 }
   0xd   : > { %p335_p4 = scmp.eq.s32.totalorder %s1017_s27, 1  ;;  %p1018_p7 = scmp.ge.s32.totalorder %s1345_s26, 1 }
   0xe   : > { %s1458_s13 = scalar_select %p316_p1, %s1341_s25, %s318_s29  }
   0xf   : > { %p1460_p5 = por %p329_p2, %p328_p0  ;;  %p1464_p6 = por %p335_p4, %p334_p3 }
  0x10   : > { %1589 = sst [smem:[#allocation13_spill]] %s1458_s13  ;;  %p342_p8 = scmp.lt.s32.totalorder %s1345_s26, 3 }
  0x11   : > { %p1153_p9 = scmp.eq.s32.totalorder %s1443_s11, 0  ;;  %s353_s19 = sshll.u32 %s1580_s6, 4  ;;  %s354_s19 = int_to_ptr.hbm [resolvable:$true] %s353_s19 }
  0x12   : > { %p1471_p10 = pnand %p1018_p7, %p342_p8  ;;  %s1347_s20 = smov [#allocation3]  }
  0x13   : > { %s355_s21 = sshll.u32 %s1347_s20, 4  ;;  %s370_s29 = sshll.u32 %s1582_s8, 4  ;;  %s356_s21 = int_to_ptr.vmem [resolvable:$true] %s355_s21  ;;  %s371_s29 = int_to_ptr.hbm [resolvable:$true] %s370_s29 }
  0x14   : > { %p1142_p11 = pneg %p1471_p10  ;;  %s1348_s30 = smov 64  }
  0x15   : > { %s1349_s13 = smov 4   ;;  %s1350_s25 = smov [#allocation6]  }
  0x16   : > { %p1143_p12 = pnand %p1153_p9, %p1142_p11  ;;  %s372_s17 = sshll.u32 %s1350_s25, 4  ;;  %s373_s17 = int_to_ptr.vmem [resolvable:$true] %s372_s17 }
  0x17   : > { %440 = sbr.rel (%p1471_p10) target bundleno = 776 (0x308), region = 68 }
  0x18   : > { %1145 = dma.hbm_to_vmem [thread:$0]  (!%p1143_p12), %s354_s19, 1024, %s356_s21, [#allocation4], %s1348_s30, %s1348_s30, %s1349_s13  }
  0x19   : > { %1148 = dma.hbm_to_vmem [thread:$0]  (!%p1143_p12), %s371_s29, 1024, %s373_s17, [#allocation7], %s1348_s30, %s1348_s30, %s1349_s13  }
  0x1c   : > { %1320 = dma.done.wait (%p1153_p9), [#allocation4], 1024  }
  0x1d   : > { %1322 = vsyncadd (%p1153_p9), [#allocation4], 4294966272 }
  0x1e   : > { %1324 = dma.done.wait (%p1153_p9), [#allocation7], 1024  }
  0x1f   : > { %1326 = vsyncadd (%p1153_p9), [#allocation7], 4294966272  ;;  %p507_p13 = scmp.lt.s32.totalorder %s1443_s11, 1  ;;  %v1121_v1 = vld [vmem:[#allocation3 + $0x38] sm:$0xff]  ;;  %v1120_v2 = vld [vmem:[#allocation3 + $0x30] sm:$0xff]  ;;  %v1351_v3 = vmov 0   ;;  %v624_v21 = vlaneseq }
  0x20   : > { %608 = vmatpush.bf16.msra.mxu0 %v1121_v1  ;;  %1197 = vset.pattern.permute.xlu0 %v1351_v3  ;;  %v1119_v5 = vld [vmem:[#allocation3 + $0x28] sm:$0xff]  ;;  %v1118_v7 = vld [vmem:[#allocation3 + $0x20] sm:$0xff]  ;;  %v1117_v8 = vld [vmem:[#allocation3 + $0x18] sm:$0xff]  ;;  %v1352_v29 = vmov 0.0   ;;  %vm640_vm1 = vcmask 130048   ;;  %v1353_v45 = vmov 8.0  }
  0x21   : > { %s1497_s25 = scalar_select %p507_p13, %s1443_s11, 1  ;;  %769 = vmatpush.bf16.msra.mxu3 %v1121_v1  ;;  %1198 = vset.pattern.permute.xlu1 %v1351_v3  ;;  %v1116_v9 = vld [vmem:[#allocation3 + $0x10] sm:$0xff]  ;;  %v1115_v10 = vld [vmem:[#allocation3 + $0x8] sm:$0xff]  ;;  %v1114_v11 = vld [vmem:[#allocation3] sm:$0xff]  ;;  %v1521_v26 = vand.u32 127, %v624_v21  ;;  %vm868_vm8 = vcmask 57344  }
  0x22   : > { %v1130_v13 = vld [vmem:[#allocation6 + $0x38] sm:$0xff]  ;;  %v1129_v15 = vld [vmem:[#allocation6 + $0x30] sm:$0xff]  ;;  %v1128_v16 = vld [vmem:[#allocation6 + $0x28] sm:$0xff]  ;;  %s505_s16 = sand.u32 1, %s1337_s24  }
  0x23   : > { %s1500_s13 = sshll.u32 %s1497_s25, 3  ;;  %733 = vmatpush.bf16.msra.mxu2 %v1130_v13  ;;  %v1127_v17 = vld [vmem:[#allocation6 + $0x20] sm:$0xff]  ;;  %v1126_v19 = vld [vmem:[#allocation6 + $0x18] sm:$0xff]  ;;  %v1125_v23 = vld [vmem:[#allocation6 + $0x10] sm:$0xff]  ;;  %s531_s20 = scalar_lea.vmem %s1579_s5, %s1497_s25 }
  0x24   : > { %s520_s19 = scalar_lea.vmem %s1576_s2, %s1500_s13  ;;  %609 = vmatpush.bf16.msra.mxu0 %v1120_v2  ;;  %s524_s22 = scalar_lea.vmem %s1577_s3, %s1500_s13  ;;  %v1199_v20 = vld [vmem:[%s1581_s7] ss:$0 sm:$0xff]  ;;  %v1124_v28 = vld [vmem:[#allocation6 + $0x8] sm:$0xff]  ;;  %v1123_v35 = vld [vmem:[#allocation6] sm:$0xff] }
  0x25   : > { %v626_v4 = vld [vmem:[%s520_s19] sm:$0xff]  ;;  %770 = vmatpush.bf16.msra.mxu3 %v1120_v2  ;;  %s511_s30 = scalar_lea.vmem %s1574_s0, %s1500_s13  ;;  %s516_s18 = scalar_lea.vmem %s1575_s1, %s1500_s13 }
  0x26   : > { %628 = vperm.xlu0 %1197, %v626_v4   ;;  %v633_v6 = vld [vmem:[%s524_s22] sm:$0xff]  ;;  %s528_s27 = scalar_lea.vmem %s1578_s4, %s1500_s13  ;;  %s506_s29 = scalar_lea.vmem [#allocation8], %s505_s16 }
  0x27   : > { %v1122_v12 = vld [vmem:[%s511_s30] sm:$0xff]  ;;  %734 = vmatpush.bf16.msra.mxu2 %v1129_v15  ;;  %s881_s30 = sshll.u32 %s506_s29, 4  ;;  %s871_s25 = scalar_lea.sflag [#allocation5], %s505_s16  ;;  %s882_s30 = int_to_ptr.vmem [resolvable:$true] %s881_s30 }
  0x28   : > { %610 = vmatpush.bf16.msra.mxu0 %v1119_v5  ;;  %v1131_v14 = vld [vmem:[%s516_s18] sm:$0xff] }
  0x29   : > { %771 = vmatpush.bf16.msra.mxu3 %v1119_v5  ;;  %v807_v44 = vld [vmem:[%s528_s27] sm:$0xff]  ;;  %s879_s27 = scalar_lea.hbm %s1586_s12, %s1443_s11 }
  0x2a   : > { %809 = vperm.xlu1 %1198, %v807_v44   ;;  %v814_v46 = vld [vmem:[#allocation2] sm:$0x1]  ;;  %s883_s13 = sshll.u32 %s879_s27, 4  ;;  %s884_s13 = int_to_ptr.hbm [resolvable:$true] %s883_s13 }
  0x2b   : > { %735 = vmatpush.bf16.msra.mxu2 %v1128_v16  ;;  %v1200_v48 = vld [vmem:[%s1583_s9] ss:$0 sm:$0xff]  ;;  %s1289_s17 = sshra.s32 %s884_s13, 4  ;;  %s1290_s17 = int_to_ptr.hbm [resolvable:$true] %s1289_s17 }
  0x2c   : > { %611 = vmatpush.bf16.msra.mxu0 %v1118_v7  ;;  %v785_v0 = vld [vmem:[%s1584_s10] sm:$0x1]  ;;  %s1291_s11 = scalar_lea.hbm %s1290_s17, 1  ;;  %p1296_p3 = scmp.lt.s32.totalorder %s1290_s17, %s1586_s12 }
  0x2d   : > { %772 = vmatpush.bf16.msra.mxu3 %v1118_v7  ;;  %v866_v21 = vld [vmem:[%s531_s20] sm:$0x1]  ;;  %p1292_p0 = scmp.ne.s32.totalorder %s1290_s17, %s1291_s11  ;;  %s1295_s20 = scalar_lea.hbm %s1586_s12, 2 }
  0x2e   : > { %636 = vperm.xlu0 %1197, %v633_v6   ;;  %p1297_p4 = scmp.lt.s32.totalorder %s1295_s20, %s1291_s11 }
  0x2f   : > { %736 = vmatpush.bf16.msra.mxu2 %v1127_v17  ;;  %p1293_p1 = pnand %p1292_p0, %p1460_p5 }
  0x30   : > { %612 = vmatpush.bf16.msra.mxu0 %v1117_v8  ;;  %p1298_p7 = por %p1297_p4, %p1296_p3 }
  0x31   : > { %773 = vmatpush.bf16.msra.mxu3 %v1117_v8  ;;  %p1294_p2 = pneg %p1293_p1 }
  0x32   : > { %817 = vperm.xlu1 %1198, %v814_v46  }
  0x33   : > { %737 = vmatpush.bf16.msra.mxu2 %v1126_v19  ;;  %p1299_p8 = pnand %p1298_p7, %p1294_p2 }
  0x34   : > { %613 = vmatpush.bf16.msra.mxu0 %v1116_v9 }
  0x35   : > { %774 = vmatpush.bf16.msra.mxu3 %v1116_v9 }
  0x37   : > { %738 = vmatpush.bf16.msra.mxu2 %v1125_v23 }
  0x38   : > { %614 = vmatpush.bf16.msra.mxu0 %v1115_v10 }
  0x39   : > { %775 = vmatpush.bf16.msra.mxu3 %v1115_v10 }
  0x3b   : > { %739 = vmatpush.bf16.msra.mxu2 %v1124_v28 }
  0x3c   : > { %615 = vmatpush.bf16.msra.mxu0 %v1114_v11 }
  0x3d   : > { %776 = vmatpush.bf16.msra.mxu3 %v1114_v11 }
  0x3f   : > { %616 = vmatmul.bf16.vlgmr.msra.gmra.mxu0 %v1122_v12  ;;  %740 = vmatpush.bf16.msra.mxu2 %v1123_v35 }
  0x40   : > { %777 = vmatmul.bf16.vlgmr.msra.gmra.mxu3 %v1131_v14 }
  0x98   : > { %v629_v22 = vpop.permute.xlu0 %628 }
  0x99   : > { %vm630_vm0 = vcmp.eq.s32.totalorder %v1521_v26, %v629_v22 }
  0x9a   : > { %v1068_v30 = vsel %vm630_vm0, 1.0, %v1352_v29 }
  0x9c   : > { %v810_v3 = vpop.permute.xlu1 %809 }
  0x9d   : > { %vm811_vm3 = vcmp.eq.s32.totalorder %v1521_v26, %v810_v3 }
  0x9e   : > { %v1106_v4 = vsel %vm811_vm3, 1.0, %v1352_v29 }
  0xa0   : > { %v637_v31 = vpop.permute.xlu0 %636 }
  0xa1   : > { %v639_v34 = vmul.f32 %v1068_v30, %v637_v31 }
  0xa4   : > { %v818_v6 = vpop.permute.xlu1 %817 }
  0xa5   : > { %v820_v7 = vperm.slane %v818_v6, 0 }
  0xbc   : > { %v617_v18 = vpop.f32.mrf.mxu0 }
  0xbd   : > { %v618_v25 = vadd.f32 %v1199_v20, %v617_v18 }
  0xc3   : > { %v778_v36 = vpop.f32.mrf.mxu3 }
  0xc4   : > { %v619_v24 = vpop.f32.mrf.mxu0  ;;  %v779_v38 = vadd.f32 %v1199_v20, %v778_v36 }
  0xc5   : > { %v620_v27 = vadd.f32 %v1199_v20, %v619_v24 }
  0xc7   : > { %1201 = vtanh.f32 %v620_v27 }
  0xc8   : > { %1203 = vtanh.f32 %v618_v25 }
  0xcb   : > { %v780_v37 = vpop.f32.mrf.mxu3 }
  0xcc   : > { %v781_v39 = vadd.f32 %v1199_v20, %v780_v37 }
  0xcd   : > { %v1202_v32 = vpop.eup %1201 }
  0xce   : > { %658 = vmatpush.msra.mxu1 %v1202_v32  ;;  %v1204_v33 = vpop.eup %1203  ;;  %1205 = vtanh.f32 %v781_v39 }
  0xcf   : > { %1207 = vtanh.f32 %v779_v38 }
  0xd0   : > { %659 = vmatpush.msra.mxu1 %v1204_v33  ;;  %1209 = vrcp.f32 %v1353_v45 }
  0xd1   : > { %1069 = vmatmul.msk.f32.vlgmr.msra.gmra.mxu1 %vm640_vm1, %v639_v34 }
  0xd4   : > { %v1206_v40 = vpop.eup %1205 }
  0xd5   : > { %801 = vmatpush.xpose.msrb.mxu1 %v1206_v40  ;;  %v1208_v41 = vpop.eup %1207 }
  0xd6   : > { %v1210_v47 = vpop.eup %1209 }
  0xd7   : > { %v754_v49 = vmul.f32 8.0, %v1210_v47  ;;  %vm758_vm2 = vweird.f32 %v1210_v47 }
  0xd9   : > { %802 = vmatpush.xpose.msrb.mxu1 %v1208_v41  ;;  %v755_v52 = vsub.f32 1.0, %v754_v49 }
  0xdb   : > { %v756_v55 = vmul.f32 %v1210_v47, %v755_v52 }
  0xdd   : > { %v757_v59 = vadd.f32 %v1210_v47, %v756_v55  ;;  %1107 = vmatpush.xpose.msk.msra.mxu1 %vm640_vm1, %v1106_v4 }
  0xdf   : > { %v759_v62 = vsel %vm758_vm2, %v1210_v47, %v757_v59 }
 0x14e   : > { %v661_v42 = vpop.f32.mrf.mxu1 }
 0x14f   : > { %v664_v43 = vpack.c.bf16 %v661_v42, %v661_v42 }
 0x151   : > { %741 = vmatmul.bf16.vlgmr.msra.gmra.mxu2 %v664_v43 }
 0x1d4   : > { %v742_v50 = vpop.f32.mrf.mxu2 }
 0x1d5   : > { %v743_v51 = vadd.f32 %v1200_v48, %v742_v50 }
 0x1d7   : > { %v746_v53 = vmax.f32 %v743_v51, 0.0 }
 0x1d9   : > { %v747_v54 = vrot.slane %v746_v53, 4 }
 0x1db   : > { %v748_v56 = vadd.f32 %v747_v54, %v746_v53 }
 0x1dc   : > { %v744_v57 = vpop.f32.mrf.mxu2 }
 0x1dd   : > { %v749_v58 = vrot.slane %v748_v56, 2 }
 0x1df   : > { %v750_v60 = vadd.f32 %v749_v58, %v748_v56 }
 0x1e1   : > { %v751_v61 = vrot.slane %v750_v60, 1 }
 0x1e3   : > { %v752_v63 = vadd.f32 %v751_v61, %v750_v60 }
 0x1e5   : > { %v760_v1 = vmul.f32 %v759_v62, %v752_v63 }
 0x1e7   : > { %v786_v2 = vmul.f32 %v785_v0, %v760_v1 }
 0x1e9   : > { %803 = vmatmul.f32.vlgmr.msrb.gmra.mxu1 %v786_v2 }
 0x266   : > { %v804_v5 = vpop.f32.mrf.mxu1 }
 0x267   : > { %1108 = vmatmul.msk.f32.vlgmr.msra.gmra.mxu1 %vm640_vm1, %v804_v5 }
 0x2e4   : > { %v844_v8 = vpop.f32.mrf.mxu1 }
 0x2e5   : > { %v845_v9 = vadd.f32 %v844_v8, %v820_v7 }
 0x2e7   : > { %v1109_v10 = vmul.f32 -1.442695, %v845_v9 }
 0x2e9   : > { %1211 = vpow2.f32 %v1109_v10 }
 0x2ef   : > { %v1212_v11 = vpop.eup %1211 }
 0x2f0   : > { %v850_v12 = vadd.f32 1.0, %v1212_v11 }
 0x2f2   : > { %1213 = vrcp.f32 %v850_v12  ;;  %v862_v16 = vand.u32 2147483648, %v850_v12  ;;  %v860_v18 = vand.u32 2147483647, %v850_v12  ;;  %vm856_vm5 = vweird.f32 %v850_v12 }
 0x2f4   : > { %v863_v20 = vor.u32 1.1754944e-38, %v862_v16  ;;  %vm861_vm7 = vcmp.eq.f32.partialorder %v860_v18, 8.507059e+37 }
 0x2f8   : > { %v1214_v13 = vpop.eup %1213 }
 0x2f9   : > { %v852_v14 = vmul.f32 %v1214_v13, %v850_v12  ;;  %vm857_vm4 = vweird.f32 %v1214_v13 }
 0x2fa   : > { %vm858_vm6 = vmor %vm856_vm5, %vm857_vm4 }
 0x2fb   : > { %v853_v15 = vsub.f32 1.0, %v852_v14 }
 0x2fd   : > { %v854_v17 = vmul.f32 %v1214_v13, %v853_v15 }
 0x2ff   : > { %v855_v19 = vadd.f32 %v1214_v13, %v854_v17 }
 0x301   : > { %v859_v22 = vsel %vm858_vm6, %v1214_v13, %v855_v19 }
 0x302   : > { %v864_v23 = vsel %vm861_vm7, %v863_v20, %v859_v22 }
 0x303   : > { %v867_v24 = vmul.f32 %v866_v21, %v864_v23 }
 0x305   : > { %869 = vst.msk [vmem:[%s506_s29] sm:$0x1] %vm868_vm8, %v867_v24 }
 0x306   : > { %1302 = shalt.err (!%p1299_p8)
}
 0x307   : > { %1140 = dma.vmem_to_hbm [thread:$0]  (%p1460_p5), %s882_s30, 16, %s884_s13, %s871_s25  }
 0x308 PF: > { %p1157_p9 = scmp.ge.s32.totalorder %s1345_s26, 2  ;;  %s895_s16 = sand.u32 1, %s1333_s23  }
 0x309   : > { %s896_s27 = scalar_lea.sflag [#allocation5], %s895_s16 }
 0x30a   : > { %p1150_p10 = pnand %p1157_p9, %p1464_p6 }
 0x30c   : > { %p1151_p11 = pneg %p1150_p10 }
 0x30e   : > { %1328 = dma.done.wait (%p1151_p11), %s896_s27, 16  }
 0x30f   : > { %1330 = vsyncadd (%p1151_p11), %s896_s27, 4294967280  ;;  %s1593_s29 = sld [smem:[#allocation12_spill]]  ;;  %p26_p12 = scmp.ge.s32.totalorder %s1447_s28, 4  }
 0x310   : > { %s1594_s25 = sld [smem:[#allocation13_spill]]  ;;  %s1595_s23 = smov %s1337_s24 }
 0x311   : > { %s1597_s26 = smov %s1447_s28  ;;  %28 = sbr.rel (!%p26_p12) target bundleno = 8 (0x8), region = 127 }
 0x315   : > { %s1596_s24 = smov %s1593_s29 }
 0x316   :  { %901 = vsyncpa [#allocation4], 1 }
 0x317   :  { %903 = vsyncpa [#allocation4 + $0x1], 1 }
 0x318   :  { %904 = vsyncpa [#allocation7], 1 }
 0x319   :  { %905 = vsyncpa [#allocation5], 1 }
 0x31a   :  { %907 = vsyncpa [#allocation5 + $0x1], 1 }

</bundles_post_ra>
